<compile_context>
chip_gen: v7x
topology: tpu7x:2x2x1
jax: 0.10.0
libtpu: 0.0.40
codegen_flags: <defaults>
</compile_context>

<pallas_src>
import functools

import jax
import jax.numpy as jnp
from jax.experimental import pallas as pl
from jax.experimental.pallas import tpu as pltpu

HIDDEN = 256
LANE = 128


def _round_up(x, m):
    return (x + m - 1) // m * m


# ----------------------------- Pallas kernel ------------------------------ #

def _projector_kernel(x_ref, w_in_ref, b_in_ref, w3_ref, b3_ref, o_ref):
    # x_ref:    (C, TM)    f32  channel-major pixel tile (pixels on lane axis)
    # w_in_ref: (256, C)   bf16 this head's conv1/conv2 weight (matmul form)
    # b_in_ref: (256, 1)   f32
    # w3_ref:   (OUT, 256) bf16 shared conv3 weight
    # b3_ref:   (OUT, 1)   f32
    # o_ref:    (OUT, TM)  f32
    x = x_ref[...].astype(w_in_ref.dtype)          # VPU cast -> MXU bf16 path
    h = jnp.dot(w_in_ref[...], x, preferred_element_type=jnp.float32)
    h = jnp.maximum(h + b_in_ref[...], 0.0)        # bias + ReLU in f32
    y = jnp.dot(w3_ref[...], h.astype(w3_ref.dtype),
                preferred_element_type=jnp.float32)
    o_ref[...] = (y + b3_ref[...]).astype(o_ref.dtype)


# ------------------------------ Tiling logic ------------------------------ #

def _choose_tile(hw_padded, c, out_dim, *, max_tm=4096, budget_bytes=20 << 20):
    """Pixel-tile size along the lane axis (hw_padded is a multiple of 128).

    Per-step VMEM ~ TM * (2x double-buffered f32 x block + 2x double-buffered
    f32 out block + f32 (256, TM) intermediate + its bf16 copy).
    """
    per_px = 4 * 2 * c + 4 * 2 * out_dim + (4 + 2) * HIDDEN
    cap = max(LANE, min(max_tm, (budget_bytes // per_px) // LANE * LANE))
    if hw_padded <= cap:
        return hw_padded
    t = cap
    while t >= LANE:
        if hw_padded % t == 0:
            return t
        t -= LANE
    return LANE  # unreachable: hw_padded % 128 == 0 guarantees t=128 divides


def _vmem_limit_bytes(tm, c, out_dim):
    est = tm * (4 * 2 * c + 4 * 2 * out_dim + (4 + 2) * HIDDEN)
    est += 4 * HIDDEN * (c + out_dim + 2) + (1 << 20)
    # >= default 32 MiB, <= 48 MiB so we never crowd v7x's 64 MiB physical VMEM.
    return int(min(48 << 20, max(32 << 20, 2 * est)))


def _run_head(x_ncm, w_in, b_in, w3, b3):
    """One head: y[n, :, m] = w3 @ relu(w_in @ x[n, :, m] + b_in) + b3.

    x_ncm: (N, C, HW) f32 with HW a multiple of 128.
    w_in:  (256, C)  (bf16)   b_in: (256, 1) f32
    w3:    (OUT, 256) (bf16)  b3:   (OUT, 1) f32
    returns (N, OUT, HW) f32
    """
    n, c, hw = x_ncm.shape
    hid = w_in.shape[0]
    out_dim = w3.shape[0]
    tm = _choose_tile(hw, c, out_dim)
    grid = (n, hw // tm)

    return pl.pallas_call(
        _projector_kernel,
        out_shape=jax.ShapeDtypeStruct((n, out_dim, hw), jnp.float32),
        grid_spec=pltpu.PrefetchScalarGridSpec(
            num_scalar_prefetch=0,
            grid=grid,
            in_specs=[
                # activation tile for (sample, pixel-tile); batch dim squeezed
                pl.BlockSpec((None, c, tm), lambda b, m: (b, 0, m)),
                # weights/biases: constant block index -> VMEM-resident
                pl.BlockSpec((hid, c), lambda b, m: (0, 0)),
                pl.BlockSpec((hid, 1), lambda b, m: (0, 0)),
                pl.BlockSpec((out_dim, hid), lambda b, m: (0, 0)),
                pl.BlockSpec((out_dim, 1), lambda b, m: (0, 0)),
            ],
            out_specs=pl.BlockSpec((None, out_dim, tm),
                                   lambda b, m: (b, 0, m)),
        ),
        compiler_params=pltpu.CompilerParams(
            dimension_semantics=("parallel", "parallel"),
            vmem_limit_bytes=_vmem_limit_bytes(tm, c, out_dim),
        ),
    )(x_ncm, w_in, b_in, w3, b3)


# ------------------------------ Module wrapper ----------------------------- #

def _avg_pool2d_2x2(x_nchw):
    # F.avg_pool2d(x, kernel_size=2, stride=2) on NCHW (plain-JAX glue).
    # Odd trailing rows/cols are dropped, matching PyTorch's floor behavior.
    n, c, h, w = x_nchw.shape
    h2, w2 = h // 2, w // 2
    x = x_nchw[:, :, :h2 * 2, :w2 * 2]
    return x.reshape(n, c, h2, 2, w2, 2).mean(axis=(3, 5))


class ProjectorPallas:
    """JAX/Pallas reimplementation of the PyTorch Projector module."""

    def __init__(self, in_dim1, in_dim2, out_dim, downsample=False, *,
                 key=None, compute_dtype=jnp.bfloat16):
        self.in_dim1 = in_dim1
        self.in_dim2 = in_dim2
        self.out_dim = out_dim
        self.downsample = downsample
        self.compute_dtype = compute_dtype
        hid = HIDDEN

        if key is None:
            key = jax.random.PRNGKey(0)
        k1, k2, k3 = jax.random.split(key, 3)

        # Deterministic synthetic init matching PyTorch Conv2d defaults:
        # weight/bias ~ U(-1/sqrt(fan_in), +1/sqrt(fan_in)).  Stored in the
        # transposed matmul form: W (out, in), b (out, 1).  f32 masters for
        # the reference; compute_dtype copies for the kernel.
        def init_layer(k, fan_in, fan_out):
            kw, kb = jax.random.split(k)
            bound = float(fan_in) ** -0.5
            w = jax.random.uniform(kw, (fan_out, fan_in), jnp.float32,
                                   minval=-bound, maxval=bound)
            b = jax.random.uniform(kb, (fan_out, 1), jnp.float32,
                                   minval=-bound, maxval=bound)
            return w, b

        self.w1_t, self.b1 = init_layer(k1, in_dim1, hid)   # conv1
        self.w2_t, self.b2 = init_layer(k2, in_dim2, hid)   # conv2
        self.w3_t, self.b3 = init_layer(k3, hid, out_dim)   # conv3 (shared)

        # Kernel-side weight copies (one-time cast; biases stay f32).
        self.w1_k = self.w1_t.astype(compute_dtype)
        self.w2_k = self.w2_t.astype(compute_dtype)
        self.w3_k = self.w3_t.astype(compute_dtype)

    def _head(self, x_nchw, w_in_k, b_in):
        n, c, h, w = x_nchw.shape
        hw = h * w
        hw_p = _round_up(hw, LANE)
        xr = x_nchw.reshape(n, c, hw)            # free reshape (NCHW is channel-major)
        if hw_p != hw:
            # Rare path (H*W not a multiple of 128): pad pixels so every store
            # is lane-dense; padded pixels are sliced off below.
            xr = jnp.pad(xr, ((0, 0), (0, 0), (0, hw_p - hw)))
        o = _run_head(xr, w_in_k, b_in, self.w3_k, self.b3)
        if hw_p != hw:
            o = o[:, :, :hw]
        return o.reshape(n, self.out_dim, h, w)

    @functools.partial(jax.jit, static_argnums=0)
    def __call__(self, x1_nchw, x2_nchw):
        if self.downsample:
            x1_nchw = _avg_pool2d_2x2(x1_nchw)
            x2_nchw = _avg_pool2d_2x2(x2_nchw)
        y1 = self._head(x1_nchw, self.w1_k, self.b1)
        y2 = self._head(x2_nchw, self.w2_k, self.b2)
        return y1, y2


# ------------------------------- Reference -------------------------------- #

def _reference(proj, x1, x2):
    if proj.downsample:
        x1 = _avg_pool2d_2x2(x1)
        x2 = _avg_pool2d_2x2(x2)

    def head(x, w_t, b):
        n, c, hh, ww = x.shape
        xr = x.reshape(n, c, hh * ww)
        h = jnp.maximum(
            jnp.einsum('oc,ncm->nom', w_t, xr, precision='highest') + b[None],
            0.0)
        y = jnp.einsum('oc,ncm->nom', proj.w3_t, h,
                       precision='highest') + proj.b3[None]
        return y.reshape(n, proj.out_dim, hh, ww)

    return head(x1, proj.w1_t, proj.b1), head(x2, proj.w2_t, proj.b2)


# --------------------------------- Main ------------------------------------ #

if __name__ == "__main__":
    key = jax.random.PRNGKey(0)
    kx1, kx2, kp = jax.random.split(key, 3)

    batch, in_dim1, in_dim2, out_dim, spatial = 2, 4, 8, 32, 16

    x1 = jax.random.normal(kx1, (batch, in_dim1, spatial, spatial), jnp.float32)
    x2 = jax.random.normal(kx2, (batch, in_dim2, spatial, spatial), jnp.float32)

    # bf16 MXU operands with f32 accumulation -> relaxed tolerance vs f32 ref.
    tol = dict(atol=3e-2, rtol=3e-2)

    # Case 1: downsample=True -> post-pool H*W = 64, exercises the pad-to-128
    # (lane-dense) path.
    proj = ProjectorPallas(in_dim1, in_dim2, out_dim, downsample=True, key=kp)
    y1, y2 = proj(x1, x2)
    jax.block_until_ready((y1, y2))
    r1, r2 = _reference(proj, x1, x2)
    assert y1.shape == (batch, out_dim, spatial // 2, spatial // 2)
    assert y2.shape == (batch, out_dim, spatial // 2, spatial // 2)
    assert jnp.allclose(y1, r1, **tol)
    assert jnp.allclose(y2, r2, **tol)

    # Case 2: downsample=False -> H*W = 256, already a multiple of 128
    # (no padding, single 256-wide tile per sample).
    proj2 = ProjectorPallas(in_dim1, in_dim2, out_dim, downsample=False, key=kp)
    z1, z2 = proj2(x1, x2)
    jax.block_until_ready((z1, z2))
    s1, s2 = _reference(proj2, x1, x2)
    assert z1.shape == (batch, out_dim, spatial, spatial)
    assert z2.shape == (batch, out_dim, spatial, spatial)
    assert jnp.allclose(z1, s1, **tol)
    assert jnp.allclose(z2, s2, **tol)

    print("KERNEL_OK")
</pallas_src>

<mosaic_0001>
module attributes {stable_mosaic.version = 11 : i64} {
  func.func @_projector_kernel(%arg0: i32, %arg1: i32, %arg2: memref<1x4x128xf32, #tpu.memory_space<vmem>>, %arg3: memref<256x4xbf16, #tpu.memory_space<vmem>>, %arg4: memref<256x1xf32, #tpu.memory_space<vmem>>, %arg5: memref<32x256xbf16, #tpu.memory_space<vmem>>, %arg6: memref<32x1xf32, #tpu.memory_space<vmem>>, %arg7: memref<1x32x128xf32, #tpu.memory_space<vmem>>) attributes {dimension_semantics = [#tpu.dimension_semantics<parallel>, #tpu.dimension_semantics<parallel>], iteration_bounds = array<i64: 2, 1>, scalar_prefetch = 0 : i64, scratch_operands = 0 : i64, tpu.core_type = #tpu.core_type<tc>, window_params = [{transform_indices = @transform_0, window_bounds = array<i64: 1, 4, 128>}, {pipeline_mode = #tpu.pipeline_mode<synchronous>, transform_indices = @transform_1, window_bounds = array<i64: 256, 4>}, {pipeline_mode = #tpu.pipeline_mode<synchronous>, transform_indices = @transform_2, window_bounds = array<i64: 256, 1>}, {pipeline_mode = #tpu.pipeline_mode<synchronous>, transform_indices = @transform_3, window_bounds = array<i64: 32, 256>}, {pipeline_mode = #tpu.pipeline_mode<synchronous>, transform_indices = @transform_4, window_bounds = array<i64: 32, 1>}, {transform_indices = @transform_5, window_bounds = array<i64: 1, 32, 128>}]} {
    %c0 = arith.constant 0 : index
    %c0_0 = arith.constant 0 : index
    %c0_1 = arith.constant 0 : index
    %0 = vector.load %arg2[%c0, %c0_0, %c0_1] : memref<1x4x128xf32, #tpu.memory_space<vmem>>, vector<1x4x128xf32>
    %1 = vector.shape_cast %0 : vector<1x4x128xf32> to vector<4x128xf32>
    %2 = arith.truncf %1 : vector<4x128xf32> to vector<4x128xbf16>
    %c0_2 = arith.constant 0 : index
    %c0_3 = arith.constant 0 : index
    %3 = vector.load %arg3[%c0_2, %c0_3] : memref<256x4xbf16, #tpu.memory_space<vmem>>, vector<256x4xbf16>
    %cst = arith.constant dense<0.000000e+00> : vector<256x128xf32>
    %4 = tpu.matmul %3, %2, %cst {dimension_numbers = #tpu.dot_dimension_numbers<[1], [0], [0], [1], [0, 0, 1, 1], [], []>} : vector<256x4xbf16>, vector<4x128xbf16>, vector<256x128xf32> -> vector<256x128xf32>
    %c0_4 = arith.constant 0 : index
    %c0_5 = arith.constant 0 : index
    %5 = vector.load %arg4[%c0_4, %c0_5] : memref<256x1xf32, #tpu.memory_space<vmem>>, vector<256x1xf32>
    %6 = vector.broadcast %5 : vector<256x1xf32> to vector<256x128xf32>
    %7 = arith.addf %4, %6 : vector<256x128xf32>
    %cst_6 = arith.constant 0.000000e+00 : f32
    %8 = vector.broadcast %cst_6 : f32 to vector<256x128xf32>
    %9 = arith.maximumf %7, %8 : vector<256x128xf32>
    %c0_7 = arith.constant 0 : index
    %c0_8 = arith.constant 0 : index
    %10 = vector.load %arg5[%c0_7, %c0_8] : memref<32x256xbf16, #tpu.memory_space<vmem>>, vector<32x256xbf16>
    %11 = arith.truncf %9 : vector<256x128xf32> to vector<256x128xbf16>
    %cst_9 = arith.constant dense<0.000000e+00> : vector<32x128xf32>
    %12 = tpu.matmul %10, %11, %cst_9 {dimension_numbers = #tpu.dot_dimension_numbers<[1], [0], [0], [1], [0, 0, 1, 1], [], []>} : vector<32x256xbf16>, vector<256x128xbf16>, vector<32x128xf32> -> vector<32x128xf32>
    %c0_10 = arith.constant 0 : index
    %c0_11 = arith.constant 0 : index
    %13 = vector.load %arg6[%c0_10, %c0_11] : memref<32x1xf32, #tpu.memory_space<vmem>>, vector<32x1xf32>
    %14 = vector.broadcast %13 : vector<32x1xf32> to vector<32x128xf32>
    %15 = arith.addf %12, %14 : vector<32x128xf32>
    %c0_12 = arith.constant 0 : index
    %c0_13 = arith.constant 0 : index
    %c0_14 = arith.constant 0 : index
    %16 = vector.load %arg7[%c0_12, %c0_13, %c0_14] : memref<1x32x128xf32, #tpu.memory_space<vmem>>, vector<1x32x128xf32>
    %17 = vector.shape_cast %16 : vector<1x32x128xf32> to vector<32x128xf32>
    %18 = vector.shape_cast %15 : vector<32x128xf32> to vector<1x32x128xf32>
    tpu.vector_store %arg7[%c0_12, %c0_13, %c0_14], %18 {strides = array<i32>} : memref<1x32x128xf32, #tpu.memory_space<vmem>>, vector<1x32x128xf32>,
    return
  }
  func.func @transform_0(%arg0: i32, %arg1: i32) -> (i32, i32, i32) {
    %c0_i32 = arith.constant 0 : i32
    %c0_i32_0 = arith.constant 0 : i32
    return %arg0, %c0_i32, %arg1 : i32, i32, i32
  }
  func.func @transform_1(%arg0: i32, %arg1: i32) -> (i32, i32) {
    %c0_i32 = arith.constant 0 : i32
    %c0_i32_0 = arith.constant 0 : i32
    %c0_i32_1 = arith.constant 0 : i32
    return %c0_i32, %c0_i32_0 : i32, i32
  }
  func.func @transform_2(%arg0: i32, %arg1: i32) -> (i32, i32) {
    %c0_i32 = arith.constant 0 : i32
    %c0_i32_0 = arith.constant 0 : i32
    %c0_i32_1 = arith.constant 0 : i32
    return %c0_i32, %c0_i32_0 : i32, i32
  }
  func.func @transform_3(%arg0: i32, %arg1: i32) -> (i32, i32) {
    %c0_i32 = arith.constant 0 : i32
    %c0_i32_0 = arith.constant 0 : i32
    %c0_i32_1 = arith.constant 0 : i32
    return %c0_i32, %c0_i32_0 : i32, i32
  }
  func.func @transform_4(%arg0: i32, %arg1: i32) -> (i32, i32) {
    %c0_i32 = arith.constant 0 : i32
    %c0_i32_0 = arith.constant 0 : i32
    %c0_i32_1 = arith.constant 0 : i32
    return %c0_i32, %c0_i32_0 : i32, i32
  }
  func.func @transform_5(%arg0: i32, %arg1: i32) -> (i32, i32, i32) {
    %c0_i32 = arith.constant 0 : i32
    %c0_i32_0 = arith.constant 0 : i32
    return %arg0, %c0_i32, %arg1 : i32, i32, i32
  }
}

module attributes {stable_mosaic.version = 11 : i64} {
  func.func @_projector_kernel(%arg0: i32, %arg1: i32, %arg2: memref<1x8x128xf32, #tpu.memory_space<vmem>>, %arg3: memref<256x8xbf16, #tpu.memory_space<vmem>>, %arg4: memref<256x1xf32, #tpu.memory_space<vmem>>, %arg5: memref<32x256xbf16, #tpu.memory_space<vmem>>, %arg6: memref<32x1xf32, #tpu.memory_space<vmem>>, %arg7: memref<1x32x128xf32, #tpu.memory_space<vmem>>) attributes {dimension_semantics = [#tpu.dimension_semantics<parallel>, #tpu.dimension_semantics<parallel>], iteration_bounds = array<i64: 2, 1>, scalar_prefetch = 0 : i64, scratch_operands = 0 : i64, tpu.core_type = #tpu.core_type<tc>, window_params = [{transform_indices = @transform_0, window_bounds = array<i64: 1, 8, 128>}, {pipeline_mode = #tpu.pipeline_mode<synchronous>, transform_indices = @transform_1, window_bounds = array<i64: 256, 8>}, {pipeline_mode = #tpu.pipeline_mode<synchronous>, transform_indices = @transform_2, window_bounds = array<i64: 256, 1>}, {pipeline_mode = #tpu.pipeline_mode<synchronous>, transform_indices = @transform_3, window_bounds = array<i64: 32, 256>}, {pipeline_mode = #tpu.pipeline_mode<synchronous>, transform_indices = @transform_4, window_bounds = array<i64: 32, 1>}, {transform_indices = @transform_5, window_bounds = array<i64: 1, 32, 128>}]} {
    %c0 = arith.constant 0 : index
    %c0_0 = arith.constant 0 : index
    %c0_1 = arith.constant 0 : index
    %0 = vector.load %arg2[%c0, %c0_0, %c0_1] : memref<1x8x128xf32, #tpu.memory_space<vmem>>, vector<1x8x128xf32>
    %1 = vector.shape_cast %0 : vector<1x8x128xf32> to vector<8x128xf32>
    %2 = arith.truncf %1 : vector<8x128xf32> to vector<8x128xbf16>
    %c0_2 = arith.constant 0 : index
    %c0_3 = arith.constant 0 : index
    %3 = vector.load %arg3[%c0_2, %c0_3] : memref<256x8xbf16, #tpu.memory_space<vmem>>, vector<256x8xbf16>
    %cst = arith.constant dense<0.000000e+00> : vector<256x128xf32>
    %4 = tpu.matmul %3, %2, %cst {dimension_numbers = #tpu.dot_dimension_numbers<[1], [0], [0], [1], [0, 0, 1, 1], [], []>} : vector<256x8xbf16>, vector<8x128xbf16>, vector<256x128xf32> -> vector<256x128xf32>
    %c0_4 = arith.constant 0 : index
    %c0_5 = arith.constant 0 : index
    %5 = vector.load %arg4[%c0_4, %c0_5] : memref<256x1xf32, #tpu.memory_space<vmem>>, vector<256x1xf32>
    %6 = vector.broadcast %5 : vector<256x1xf32> to vector<256x128xf32>
    %7 = arith.addf %4, %6 : vector<256x128xf32>
    %cst_6 = arith.constant 0.000000e+00 : f32
    %8 = vector.broadcast %cst_6 : f32 to vector<256x128xf32>
    %9 = arith.maximumf %7, %8 : vector<256x128xf32>
    %c0_7 = arith.constant 0 : index
    %c0_8 = arith.constant 0 : index
    %10 = vector.load %arg5[%c0_7, %c0_8] : memref<32x256xbf16, #tpu.memory_space<vmem>>, vector<32x256xbf16>
    %11 = arith.truncf %9 : vector<256x128xf32> to vector<256x128xbf16>
    %cst_9 = arith.constant dense<0.000000e+00> : vector<32x128xf32>
    %12 = tpu.matmul %10, %11, %cst_9 {dimension_numbers = #tpu.dot_dimension_numbers<[1], [0], [0], [1], [0, 0, 1, 1], [], []>} : vector<32x256xbf16>, vector<256x128xbf16>, vector<32x128xf32> -> vector<32x128xf32>
    %c0_10 = arith.constant 0 : index
    %c0_11 = arith.constant 0 : index
    %13 = vector.load %arg6[%c0_10, %c0_11] : memref<32x1xf32, #tpu.memory_space<vmem>>, vector<32x1xf32>
    %14 = vector.broadcast %13 : vector<32x1xf32> to vector<32x128xf32>
    %15 = arith.addf %12, %14 : vector<32x128xf32>
    %c0_12 = arith.constant 0 : index
    %c0_13 = arith.constant 0 : index
    %c0_14 = arith.constant 0 : index
    %16 = vector.load %arg7[%c0_12, %c0_13, %c0_14] : memref<1x32x128xf32, #tpu.memory_space<vmem>>, vector<1x32x128xf32>
    %17 = vector.shape_cast %16 : vector<1x32x128xf32> to vector<32x128xf32>
    %18 = vector.shape_cast %15 : vector<32x128xf32> to vector<1x32x128xf32>
    tpu.vector_store %arg7[%c0_12, %c0_13, %c0_14], %18 {strides = array<i32>} : memref<1x32x128xf32, #tpu.memory_space<vmem>>, vector<1x32x128xf32>,
    return
  }
  func.func @transform_0(%arg0: i32, %arg1: i32) -> (i32, i32, i32) {
    %c0_i32 = arith.constant 0 : i32
    %c0_i32_0 = arith.constant 0 : i32
    return %arg0, %c0_i32, %arg1 : i32, i32, i32
  }
  func.func @transform_1(%arg0: i32, %arg1: i32) -> (i32, i32) {
    %c0_i32 = arith.constant 0 : i32
    %c0_i32_0 = arith.constant 0 : i32
    %c0_i32_1 = arith.constant 0 : i32
    return %c0_i32, %c0_i32_0 : i32, i32
  }
  func.func @transform_2(%arg0: i32, %arg1: i32) -> (i32, i32) {
    %c0_i32 = arith.constant 0 : i32
    %c0_i32_0 = arith.constant 0 : i32
    %c0_i32_1 = arith.constant 0 : i32
    return %c0_i32, %c0_i32_0 : i32, i32
  }
  func.func @transform_3(%arg0: i32, %arg1: i32) -> (i32, i32) {
    %c0_i32 = arith.constant 0 : i32
    %c0_i32_0 = arith.constant 0 : i32
    %c0_i32_1 = arith.constant 0 : i32
    return %c0_i32, %c0_i32_0 : i32, i32
  }
  func.func @transform_4(%arg0: i32, %arg1: i32) -> (i32, i32) {
    %c0_i32 = arith.constant 0 : i32
    %c0_i32_0 = arith.constant 0 : i32
    %c0_i32_1 = arith.constant 0 : i32
    return %c0_i32, %c0_i32_0 : i32, i32
  }
  func.func @transform_5(%arg0: i32, %arg1: i32) -> (i32, i32, i32) {
    %c0_i32 = arith.constant 0 : i32
    %c0_i32_0 = arith.constant 0 : i32
    return %arg0, %c0_i32, %arg1 : i32, i32, i32
  }
}

</mosaic_0001>

<bundles_post_ra>
// kernel: a_call__.2
= control target key start
LH: loop header
LB: loop body
LE: loop exit
PB: predicated region body
PF: predicated region fallthrough
CT: control target
= control target key end

     0   :  { %s1234_s18 = smov 0   ;;  %s1236_s19 = smov 0   ;;  %s1527_s0 = inlined_call_operand.vmem [shape: f32[2,4,128], index: 0, kind: input, shape index: {}]   ;;  %s1528_s1 = inlined_call_operand.vmem [shape: bf16[256,4], index: 1, kind: input, shape index: {}]   ;;  %s1529_s2 = inlined_call_operand.vmem [shape: f32[256,1], index: 2, kind: input, shape index: {}]   ;;  %s1530_s3 = inlined_call_operand.vmem [shape: bf16[32,256], index: 3, kind: input, shape index: {}]   ;;  %s1531_s4 = inlined_call_operand.vmem [shape: f32[32,1], index: 4, kind: input, shape index: {}]   ;;  %s1532_s5 = inlined_call_operand.vmem [shape: f32[2,32,128], index: 5, kind: output, shape index: {}]  }
   0x1   :  { %s1238_s20 = smov 0  }
   0x2 LB: > { %s27_s21 = sadd.s32 1, %s1197_s19  ;;  %p1007_p0 = scmp.ge.s32.totalorder %s1201_s20, 1  ;;  %s1201_s20 = sphi %s1238_s20, %s15_s20   ;;  %s1197_s19 = sphi %s1236_s19, %s1534_s19   ;;  %s1193_s18 = sphi %s1234_s18, %s1533_s18  }
   0x3   : > { %p29_p1 = scmp.ge.s32.totalorder %s27_s21, 2  ;;  %p205_p2 = scmp.lt.s32.totalorder %s1201_s20, 3 }
   0x5   : > { %s1536_s21 = smov (%p29_p1, %s27_s21), 0  ;;  %p206_p3 = pnand %p1007_p0, %p205_p2 }
   0x6   : > { %p238_p4 = scmp.lt.s32.totalorder (!%p206_p3), %s1193_s18, 1  ;;  %v1157_v0 = vld [vmem:[%s1528_s1] sm:$0xff] (!%p206_p3)   ;;  %vm560_vm0 = vcmask (!%p206_p3), 31744   ;;  %v1203_v1 = vmov (!%p206_p3), 0   ;;  %vm609_vm1 = vcmask (!%p206_p3), 1041408   ;;  %v1158_v6 = vld [vmem:[%s1528_s1 + $0x8] sm:$0xff] (!%p206_p3)  }
   0x7   : > { %209 = sbr.rel (%p206_p3) target bundleno = 537 (0x219), region = 40  ;;  %1097 = vmatprep.mubr.msk.bf16.mxu0 (!%p206_p3), %vm560_vm0, %v1157_v0  ;;  %1156 = vset.pattern.permute.xlu1 (!%p206_p3), %v1203_v1  ;;  %v304_v3 = vld [vmem:[%s1529_s2 + $0x80] sm:$0xff] (!%p206_p3)  ;;  %v305_v7 = vld [vmem:[%s1529_s2 + $0x88] sm:$0xff] (!%p206_p3)  ;;  %v1159_v10 = vld [vmem:[%s1528_s1 + $0x10] sm:$0xff] (!%p206_p3)  }
   0x8   : > { %1155 = vset.pattern.permute.xlu0 (!%p206_p3), %v1203_v1  ;;  %v288_v5 = vld [vmem:[%s1529_s2] sm:$0xff] (!%p206_p3)  ;;  %v289_v9 = vld [vmem:[%s1529_s2 + $0x8] sm:$0xff] (!%p206_p3)  ;;  %v306_v11 = vld [vmem:[%s1529_s2 + $0x90] sm:$0xff] (!%p206_p3) }
   0x9   : > { %402 = vperm.xlu0 (!%p206_p3), %1155, %v304_v3   ;;  %322 = vperm.xlu1 (!%p206_p3), %1156, %v288_v5   ;;  %v307_v12 = vld [vmem:[%s1529_s2 + $0x98] sm:$0xff] (!%p206_p3)  ;;  %v290_v14 = vld [vmem:[%s1529_s2 + $0x10] sm:$0xff] (!%p206_p3)  ;;  %v1161_v16 = vld [vmem:[%s1528_s1 + $0x20] sm:$0xff] (!%p206_p3)  }
   0xa   : > { %v1160_v13 = vld [vmem:[%s1528_s1 + $0x18] sm:$0xff] (!%p206_p3)   ;;  %v308_v17 = vld [vmem:[%s1529_s2 + $0xa0] sm:$0xff] (!%p206_p3)  ;;  %v309_v18 = vld [vmem:[%s1529_s2 + $0xa8] sm:$0xff] (!%p206_p3) }
   0xb   : > { %v291_v15 = vld [vmem:[%s1529_s2 + $0x18] sm:$0xff] (!%p206_p3)  ;;  %v292_v19 = vld [vmem:[%s1529_s2 + $0x20] sm:$0xff] (!%p206_p3)  ;;  %v1162_v20 = vld [vmem:[%s1528_s1 + $0x28] sm:$0xff] (!%p206_p3)  }
   0xc   : > { %v293_v21 = vld [vmem:[%s1529_s2 + $0x28] sm:$0xff] (!%p206_p3)  ;;  %v1163_v22 = vld [vmem:[%s1528_s1 + $0x30] sm:$0xff] (!%p206_p3)   ;;  %v311_v24 = vld [vmem:[%s1529_s2 + $0xb8] sm:$0xff] (!%p206_p3) }
   0xd   : > { %407 = vperm.xlu0 (!%p206_p3), %1155, %v305_v7   ;;  %327 = vperm.xlu1 (!%p206_p3), %1156, %v289_v9   ;;  %v310_v23 = vld [vmem:[%s1529_s2 + $0xb0] sm:$0xff] (!%p206_p3)  ;;  %v1164_v26 = vld [vmem:[%s1528_s1 + $0x38] sm:$0xff] (!%p206_p3)   ;;  %v1165_v28 = vld [vmem:[%s1528_s1 + $0x40] sm:$0xff] (!%p206_p3)  }
   0xe   : > { %s1538_s18 = smov (!%p238_p4, %s1193_s18), 1  ;;  %v294_v25 = vld [vmem:[%s1529_s2 + $0x30] sm:$0xff]  ;;  %v295_v27 = vld [vmem:[%s1529_s2 + $0x38] sm:$0xff]  ;;  %v312_v29 = vld [vmem:[%s1529_s2 + $0xc0] sm:$0xff] }
   0xf   : > { %s1008_s24 = sshll.u32 %s1538_s18, 2  ;;  %v313_v30 = vld [vmem:[%s1529_s2 + $0xc8] sm:$0xff]  ;;  %v296_v31 = vld [vmem:[%s1529_s2 + $0x40] sm:$0xff]  ;;  %v1167_v34 = vld [vmem:[%s1528_s1 + $0x50] sm:$0xff]   ;;  %s1049_s8 = sshll.u32 %s1538_s18, 5 }
  0x10   : > { %s244_s27 = scalar_lea.vmem %s1527_s0, %s1008_s24  ;;  %v1166_v32 = vld [vmem:[%s1528_s1 + $0x48] sm:$0xff]   ;;  %v314_v35 = vld [vmem:[%s1529_s2 + $0xd0] sm:$0xff]  ;;  %v315_v36 = vld [vmem:[%s1529_s2 + $0xd8] sm:$0xff]  ;;  %s252_s11 = scalar_lea.vmem %s1532_s5, %s1049_s8 }
  0x11   : > { %v254_v2 = vld [vmem:[%s244_s27] sm:$0xf]  ;;  %412 = vperm.xlu0 %1155, %v306_v11   ;;  %417 = vperm.xlu1 %1156, %v307_v12   ;;  %v297_v33 = vld [vmem:[%s1529_s2 + $0x48] sm:$0xff]  ;;  %v298_v37 = vld [vmem:[%s1529_s2 + $0x50] sm:$0xff] }
  0x12   : > { %v255_v4 = vpack.c.bf16 %v254_v2, %v254_v2  ;;  %v1168_v38 = vld [vmem:[%s1528_s1 + $0x58] sm:$0xff]   ;;  %v1169_v40 = vld [vmem:[%s1528_s1 + $0x60] sm:$0xff]   ;;  %v317_v42 = vld [vmem:[%s1529_s2 + $0xe8] sm:$0xff] }
  0x13   : > { %v299_v39 = vld [vmem:[%s1529_s2 + $0x58] sm:$0xff]  ;;  %v316_v41 = vld [vmem:[%s1529_s2 + $0xe0] sm:$0xff]  ;;  %v1170_v44 = vld [vmem:[%s1528_s1 + $0x68] sm:$0xff]  }
  0x14   : > { %1129 = vmatprep.subr.msk.bf16.mxu0 %vm609_vm1, %v255_v4  ;;  %v611_v8 = vsel %vm609_vm1, %v255_v4, 0  ;;  %v300_v43 = vld [vmem:[%s1529_s2 + $0x60] sm:$0xff]  ;;  %v301_v45 = vld [vmem:[%s1529_s2 + $0x68] sm:$0xff]  ;;  %v1171_v46 = vld [vmem:[%s1528_s1 + $0x70] sm:$0xff]  }
  0x15   : > { %1096 = vmatpush3.bf16.msra.mxu0 %v611_v8  ;;  %332 = vperm.xlu0 %1155, %v290_v14   ;;  %v318_v47 = vld [vmem:[%s1529_s2 + $0xf0] sm:$0xff]  ;;  %v319_v48 = vld [vmem:[%s1529_s2 + $0xf8] sm:$0xff]  ;;  %v826_v52 = vld [vmem:[%s1531_s4] sm:$0xff] }
  0x16   : > { %337 = vperm.xlu1 %1156, %v291_v15   ;;  %v302_v49 = vld [vmem:[%s1529_s2 + $0x70] sm:$0xff]  ;;  %v1172_v50 = vld [vmem:[%s1528_s1 + $0x78] sm:$0xff]   ;;  %v827_v53 = vld [vmem:[%s1531_s4 + $0x8] sm:$0xff] }
  0x17   : > { %v303_v51 = vld [vmem:[%s1529_s2 + $0x78] sm:$0xff]  ;;  %v828_v54 = vld [vmem:[%s1531_s4 + $0x10] sm:$0xff]  ;;  %v1175_v60 = vld [vmem:[%s1530_s3 + $0x4] ss:$8 sps:$4 sm:$0xff]  }
  0x18   : > { %1098 = vmatmul.mubr.msk.bf16.vlgmr.msra.gmra.mrb[0].mxu0 %vm560_vm0, %v1158_v6  ;;  %v829_v55 = vld [vmem:[%s1531_s4 + $0x18] sm:$0xff]  ;;  %902 = vmatprep.mubr.bf16.mxu1 %v1175_v60 }
  0x19   : > { %1101 = vmatprep.mubr.msk.bf16.mxu0 %vm560_vm0, %v1159_v10  ;;  %422 = vperm.xlu0 %1155, %v308_v17  }
  0x1a   : > { %427 = vperm.xlu1 %1156, %v309_v18  }
  0x1d   : > { %342 = vperm.xlu0 %1155, %v292_v19  }
  0x1e   : > { %347 = vperm.xlu1 %1156, %v293_v21  }
  0x20   : > { %1102 = vmatmul.mubr.msk.bf16.gmra.mrb[4].mxu0 %vm560_vm0, %v1160_v13 }
  0x21   : > { %1105 = vmatprep.mubr.msk.bf16.mxu0 %vm560_vm0, %v1161_v16  ;;  %432 = vperm.xlu0 %1155, %v310_v23  }
  0x22   : > { %437 = vperm.xlu1 %1156, %v311_v24  }
  0x25   : > { %352 = vperm.xlu0 %1155, %v294_v25  }
  0x26   : > { %357 = vperm.xlu1 %1156, %v295_v27  }
  0x28   : > { %1106 = vmatmul.mubr.msk.bf16.gmra.mrb[8].mxu0 %vm560_vm0, %v1162_v20 }
  0x29   : > { %1109 = vmatprep.mubr.msk.bf16.mxu0 %vm560_vm0, %v1163_v22  ;;  %442 = vperm.xlu0 %1155, %v312_v29  }
  0x2a   : > { %447 = vperm.xlu1 %1156, %v313_v30  }
  0x2d   : > { %362 = vperm.xlu0 %1155, %v296_v31  }
  0x2e   : > { %367 = vperm.xlu1 %1156, %v297_v33  }
  0x30   : > { %1110 = vmatmul.mubr.msk.bf16.gmra.mrb[12].mxu0 %vm560_vm0, %v1164_v26 }
  0x31   : > { %1113 = vmatprep.mubr.msk.bf16.mxu0 %vm560_vm0, %v1165_v28  ;;  %452 = vperm.xlu0 %1155, %v314_v35  }
  0x32   : > { %457 = vperm.xlu1 %1156, %v315_v36  }
  0x35   : > { %372 = vperm.xlu0 %1155, %v298_v37  }
  0x36   : > { %377 = vperm.xlu1 %1156, %v299_v39  }
  0x38   : > { %1114 = vmatmul.mubr.msk.bf16.gmra.mrb[16].mxu0 %vm560_vm0, %v1166_v32 }
  0x39   : > { %1117 = vmatprep.mubr.msk.bf16.mxu0 %vm560_vm0, %v1167_v34  ;;  %462 = vperm.xlu0 %1155, %v316_v41  }
  0x3a   : > { %467 = vperm.xlu1 %1156, %v317_v42  }
  0x3d   : > { %382 = vperm.xlu0 %1155, %v300_v43  }
  0x3e   : > { %387 = vperm.xlu1 %1156, %v301_v45  }
  0x40   : > { %1118 = vmatmul.mubr.msk.bf16.gmra.mrb[20].mxu0 %vm560_vm0, %v1168_v38 }
  0x41   : > { %1121 = vmatprep.mubr.msk.bf16.mxu0 %vm560_vm0, %v1169_v40  ;;  %472 = vperm.xlu0 %1155, %v318_v47  }
  0x42   : > { %477 = vperm.xlu1 %1156, %v319_v48  }
  0x45   : > { %392 = vperm.xlu0 %1155, %v302_v49  }
  0x46   : > { %397 = vperm.xlu1 %1156, %v303_v51  }
  0x48   : > { %1122 = vmatmul.mubr.msk.bf16.gmra.mrb[24].mxu0 %vm560_vm0, %v1170_v44 }
  0x49   : > { %1125 = vmatprep.mubr.msk.bf16.mxu0 %vm560_vm0, %v1171_v46  ;;  %832 = vperm.xlu0 %1155, %v826_v52  }
  0x4a   : > { %837 = vperm.xlu1 %1156, %v827_v53  }
  0x4d   : > { %842 = vperm.xlu0 %1155, %v828_v54  }
  0x4e   : > { %847 = vperm.xlu1 %1156, %v829_v55  }
  0x50   : > { %1126 = vmatmul.mubr.msk.bf16.gmra.mrb[28].mxu0 %vm560_vm0, %v1172_v50 }
  0x88   : > { %v1430_v56 = vpop.permute.xlu0 %402  ;;  %v323_v57 = vpop.permute.xlu1 %322 }
  0x8c   : > { %v1432_v58 = vpop.permute.xlu0 %407  ;;  %v328_v59 = vpop.permute.xlu1 %327 }
  0x90   : > { %v1437_v61 = vpop.permute.xlu0 %412  ;;  %v1439_v62 = vpop.permute.xlu1 %417 }
  0x94   : > { %v333_v63 = vpop.permute.xlu0 %332 }
  0x95   : > { %v338_v0 = vpop.permute.xlu1 %337 }
  0x98   : > { %v1441_v1 = vpop.permute.xlu0 %422 }
  0x99   : > { %v1443_v2 = vpop.permute.xlu1 %427 }
  0x9c   : > { %v343_v3 = vpop.permute.xlu0 %342 }
  0x9d   : > { %v348_v4 = vpop.permute.xlu1 %347 }
  0xa0   : > { %v1445_v5 = vpop.permute.xlu0 %432 }
  0xa1   : > { %v1447_v6 = vpop.permute.xlu1 %437 }
  0xa4   : > { %v353_v7 = vpop.permute.xlu0 %352 }
  0xa5   : > { %v358_v8 = vpop.permute.xlu1 %357 }
  0xa8   : > { %v1449_v9 = vpop.permute.xlu0 %442 }
  0xa9   : > { %v1451_v10 = vpop.permute.xlu1 %447 }
  0xac   : > { %v363_v11 = vpop.permute.xlu0 %362 }
  0xad   : > { %v368_v12 = vpop.permute.xlu1 %367 }
  0xb0   : > { %v1453_v13 = vpop.permute.xlu0 %452 }
  0xb1   : > { %v1455_v14 = vpop.permute.xlu1 %457 }
  0xb4   : > { %v373_v15 = vpop.permute.xlu0 %372 }
  0xb5   : > { %v378_v19 = vpop.permute.xlu1 %377 }
  0xb8   : > { %v1457_v27 = vpop.permute.xlu0 %462 }
  0xb9   : > { %v1461_v31 = vpop.permute.xlu1 %467 }
  0xbc   : > { %v383_v40 = vpop.permute.xlu0 %382 }
  0xbd   : > { %v388_v44 = vpop.permute.xlu1 %387 }
  0xc0   : > { %v1469_v52 = vpop.permute.xlu0 %472 }
  0xeb   : > { %v1099_v16 = vpop.f32.mrb[0].mxu0 }
  0xec   : > { %v656_v17 = vadd.f32 %v1099_v16, %v333_v63  ;;  %v647_v18 = vpop.f32.mrb[1].mxu0 }
  0xed   : > { %v648_v20 = vadd.f32 %v647_v18, %v323_v57  ;;  %v1100_v21 = vpop.f32.mrb[2].mxu0 }
  0xee   : > { %v659_v22 = vadd.f32 %v1100_v21, %v338_v0  ;;  %v650_v23 = vpop.f32.mrb[3].mxu0  ;;  %v776_v25 = vmax.f32 %v656_v17, 0.0 }
  0xef   : > { %v651_v24 = vadd.f32 %v650_v23, %v328_v59  ;;  %v774_v28 = vmax.f32 %v648_v20, 0.0  ;;  %v1471_v59 = vpop.permute.xlu1 %477 }
  0xf0   : > { %v777_v26 = vmax.f32 %v659_v22, 0.0 }
  0xf1   : > { %v775_v29 = vmax.f32 %v651_v24, 0.0 }
  0xf2   : > { %v1459_v30 = vpack.c.bf16 %v777_v26, %v776_v25 }
  0xf3   : > { %v1103_v32 = vpop.f32.mrb[4].mxu0  ;;  %v1463_v33 = vpack.c.bf16 %v775_v29, %v774_v28  ;;  %v398_v20 = vpop.permute.xlu1 %397 }
  0xf4   : > { %v672_v34 = vadd.f32 %v1103_v32, %v353_v7  ;;  %v663_v35 = vpop.f32.mrb[5].mxu0 }
  0xf5   : > { %v664_v36 = vadd.f32 %v663_v35, %v343_v3  ;;  %v1104_v37 = vpop.f32.mrb[6].mxu0 }
  0xf6   : > { %v675_v38 = vadd.f32 %v1104_v37, %v358_v8  ;;  %v666_v39 = vpop.f32.mrb[7].mxu0  ;;  %v780_v42 = vmax.f32 %v672_v34, 0.0  ;;  %v393_v8 = vpop.permute.xlu0 %392 }
  0xf7   : > { %v667_v41 = vadd.f32 %v666_v39, %v348_v4  ;;  %v778_v45 = vmax.f32 %v664_v36, 0.0 }
  0xf8   : > { %v781_v43 = vmax.f32 %v675_v38, 0.0 }
  0xf9   : > { %v779_v46 = vmax.f32 %v667_v41, 0.0 }
  0xfa   : > { %v1465_v47 = vpack.c.bf16 %v781_v43, %v780_v42 }
  0xfb   : > { %v1467_v48 = vpack.c.bf16 %v779_v46, %v778_v45  ;;  %v1107_v49 = vpop.f32.mrb[8].mxu0 }
  0xfc   : > { %v688_v50 = vadd.f32 %v1107_v49, %v373_v15  ;;  %v679_v51 = vpop.f32.mrb[9].mxu0 }
  0xfd   : > { %v680_v53 = vadd.f32 %v679_v51, %v363_v11  ;;  %v1108_v54 = vpop.f32.mrb[10].mxu0 }
  0xfe   : > { %v691_v55 = vadd.f32 %v1108_v54, %v378_v19  ;;  %v682_v57 = vpop.f32.mrb[11].mxu0  ;;  %v784_v63 = vmax.f32 %v688_v50, 0.0 }
  0xff   : > { %v683_v60 = vadd.f32 %v682_v57, %v368_v12  ;;  %v782_v3 = vmax.f32 %v680_v53, 0.0 }
 0x100   : > { %v785_v0 = vmax.f32 %v691_v55, 0.0 }
 0x101   : > { %v783_v4 = vmax.f32 %v683_v60, 0.0 }
 0x102   : > { %v1473_v7 = vpack.c.bf16 %v785_v0, %v784_v63 }
 0x103   : > { %v1475_v16 = vpack.c.bf16 %v783_v4, %v782_v3  ;;  %v1111_v15 = vpop.f32.mrb[12].mxu0 }
 0x104   : > { %v704_v17 = vadd.f32 %v1111_v15, %v393_v8  ;;  %v695_v18 = vpop.f32.mrb[13].mxu0 }
 0x105   : > { %v696_v11 = vadd.f32 %v695_v18, %v383_v40  ;;  %v1112_v21 = vpop.f32.mrb[14].mxu0 }
 0x106   : > { %v707_v19 = vadd.f32 %v1112_v21, %v398_v20  ;;  %v698_v22 = vpop.f32.mrb[15].mxu0  ;;  %v788_v24 = vmax.f32 %v704_v17, 0.0 }
 0x107   : > { %v699_v23 = vadd.f32 %v698_v22, %v388_v44  ;;  %v786_v25 = vmax.f32 %v696_v11, 0.0 }
 0x108   : > { %v789_v12 = vmax.f32 %v707_v19, 0.0 }
 0x109   : > { %v787_v26 = vmax.f32 %v699_v23, 0.0 }
 0x10a   : > { %v1477_v28 = vpack.c.bf16 %v789_v12, %v788_v24 }
 0x10b   : > { %v1479_v29 = vpack.c.bf16 %v787_v26, %v786_v25  ;;  %v1115_v32 = vpop.f32.mrb[16].mxu0 }
 0x10c   : > { %v720_v34 = vadd.f32 %v1115_v32, %v1437_v61  ;;  %v711_v35 = vpop.f32.mrb[17].mxu0 }
 0x10d   : > { %v712_v36 = vadd.f32 %v711_v35, %v1430_v56  ;;  %v1116_v37 = vpop.f32.mrb[18].mxu0 }
 0x10e   : > { %v723_v38 = vadd.f32 %v1116_v37, %v1439_v62  ;;  %v714_v39 = vpop.f32.mrb[19].mxu0  ;;  %v792_v41 = vmax.f32 %v720_v34, 0.0 }
 0x10f   : > { %v715_v40 = vadd.f32 %v714_v39, %v1432_v58  ;;  %v790_v43 = vmax.f32 %v712_v36, 0.0  ;;  %v838_v36 = vpop.permute.xlu1 %837 }
 0x110   : > { %v793_v42 = vmax.f32 %v723_v38, 0.0 }
 0x111   : > { %v791_v44 = vmax.f32 %v715_v40, 0.0 }
 0x112   : > { %v819_v45 = vpack.c.bf16 %v793_v42, %v792_v41 }
 0x113   : > { %v1119_v46 = vpop.f32.mrb[20].mxu0  ;;  %v818_v49 = vpack.c.bf16 %v791_v44, %v790_v43 }
 0x114   : > { %v736_v50 = vadd.f32 %v1119_v46, %v1445_v5  ;;  %v727_v51 = vpop.f32.mrb[21].mxu0  ;;  %v848_v46 = vpop.permute.xlu1 %847 }
 0x115   : > { %v728_v61 = vadd.f32 %v727_v51, %v1441_v1  ;;  %v1120_v53 = vpop.f32.mrb[22].mxu0  ;;  %1067 = vmatprep.subr.bf16.mxu1 %v818_v49 }
 0x116   : > { %v739_v56 = vadd.f32 %v1120_v53, %v1447_v6  ;;  %v730_v62 = vpop.f32.mrb[23].mxu0  ;;  %1068 = vmatpush3.bf16.msra.mxu1 %v1463_v33  ;;  %v796_v54 = vmax.f32 %v736_v50, 0.0 }
 0x117   : > { %v731_v58 = vadd.f32 %v730_v62, %v1443_v2  ;;  %1069 = vmatprep.subr.bf16.mxu1 %v819_v45  ;;  %v794_v57 = vmax.f32 %v728_v61, 0.0 }
 0x118   : > { %v797_v55 = vmax.f32 %v739_v56, 0.0 }
 0x119   : > { %v795_v60 = vmax.f32 %v731_v58, 0.0 }
 0x11a   : > { %v821_v63 = vpack.c.bf16 %v797_v55, %v796_v54  ;;  %1070 = vmatpush3.bf16.msra.mxu1 %v1459_v30 }
 0x11b   : > { %v820_v5 = vpack.c.bf16 %v795_v60, %v794_v57  ;;  %v1123_v0 = vpop.f32.mrb[24].mxu0 }
 0x11c   : > { %v752_v1 = vadd.f32 %v1123_v0, %v1453_v13  ;;  %v743_v3 = vpop.f32.mrb[25].mxu0 }
 0x11d   : > { %v744_v6 = vadd.f32 %v743_v3, %v1449_v9  ;;  %v1124_v4 = vpop.f32.mrb[26].mxu0  ;;  %1071 = vmatprep.subr.bf16.mxu1 %v820_v5 }
 0x11e   : > { %v755_v33 = vadd.f32 %v1124_v4, %v1455_v14  ;;  %v746_v2 = vpop.f32.mrb[27].mxu0  ;;  %1072 = vmatpush3.bf16.msra.mxu1 %v1467_v48  ;;  %v800_v15 = vmax.f32 %v752_v1, 0.0 }
 0x11f   : > { %v747_v8 = vadd.f32 %v746_v2, %v1451_v10  ;;  %1073 = vmatprep.subr.bf16.mxu1 %v821_v63  ;;  %v798_v30 = vmax.f32 %v744_v6, 0.0 }
 0x120   : > { %v801_v17 = vmax.f32 %v755_v33, 0.0 }
 0x121   : > { %v799_v18 = vmax.f32 %v747_v8, 0.0 }
 0x122   : > { %v823_v20 = vpack.c.bf16 %v801_v17, %v800_v15  ;;  %1074 = vmatpush3.bf16.msra.mxu1 %v1465_v47 }
 0x123   : > { %v822_v13 = vpack.c.bf16 %v799_v18, %v798_v30  ;;  %v1127_v11 = vpop.f32.mrb[28].mxu0 }
 0x124   : > { %v768_v9 = vadd.f32 %v1127_v11, %v1469_v52  ;;  %v759_v21 = vpop.f32.mrb[29].mxu0 }
 0x125   : > { %v760_v14 = vadd.f32 %v759_v21, %v1457_v27  ;;  %v1128_v19 = vpop.f32.mrb[30].mxu0  ;;  %1075 = vmatprep.subr.bf16.mxu1 %v822_v13  ;;  %v1173_v27 = vld [vmem:[%s1530_s3] ss:$8 sps:$4 sm:$0xff]  }
 0x126   : > { %v771_v48 = vadd.f32 %v1128_v19, %v1471_v59  ;;  %v762_v10 = vpop.f32.mrb[31].mxu0  ;;  %1076 = vmatpush3.bf16.msra.mxu1 %v1475_v16  ;;  %v804_v23 = vmax.f32 %v768_v9, 0.0  ;;  %v1178_v59 = vld [vmem:[%s1530_s3 + $0x10] ss:$8 sps:$4 sm:$0xff]  }
 0x127   : > { %v763_v22 = vadd.f32 %v762_v10, %v1461_v31  ;;  %1077 = vmatprep.subr.bf16.mxu1 %v823_v20  ;;  %v802_v47 = vmax.f32 %v760_v14, 0.0  ;;  %v1176_v31 = vld [vmem:[%s1530_s3 + $0x14] ss:$8 sps:$4 sm:$0xff]  }
 0x128   : > { %v805_v24 = vmax.f32 %v771_v48, 0.0 }
 0x129   : > { %v803_v12 = vmax.f32 %v763_v22, 0.0 }
 0x12a   : > { %v825_v25 = vpack.c.bf16 %v805_v24, %v804_v23  ;;  %1078 = vmatpush3.bf16.msra.mxu1 %v1473_v7 }
 0x12b   : > { %v824_v52 = vpack.c.bf16 %v803_v12, %v802_v47 }
 0x12d   : > { %1079 = vmatprep.subr.bf16.mxu1 %v824_v52 }
 0x12e   : > { %1080 = vmatpush3.bf16.msra.mxu1 %v1479_v29 }
 0x12f   : > { %1081 = vmatprep.subr.bf16.mxu1 %v825_v25 }
 0x132   : > { %1082 = vmatpush3.bf16.msra.mxu1 %v1477_v28  ;;  %v833_v28 = vpop.permute.xlu0 %832 }
 0x135   : > { %903 = vmatmul.mubr.bf16.vlgmr.msra.gmra.mrb[0].mxu1 %v1173_v27 }
 0x136   : > { %910 = vmatprep.mubr.bf16.mxu1 %v1176_v31  ;;  %v843_v42 = vpop.permute.xlu0 %842 }
 0x13d   : > { %911 = vmatmul.mubr.bf16.gmra.mrb[4].mxu1 %v1178_v59 }
 0x208   : > { %v1083_v7 = vpop.f32.mrb[0].mxu1 }
 0x209   : > { %v1084_v16 = vpop.f32.mrb[1].mxu1 }
 0x20a   : > { %v1085_v26 = vadd.f32 %v1084_v16, %v1083_v7  ;;  %v1086_v29 = vpop.f32.mrb[2].mxu1 }
 0x20b   : > { %v1087_v32 = vpop.f32.mrb[3].mxu1 }
 0x20c   : > { %v905_v34 = vadd.f32 %v1085_v26, %v833_v28  ;;  %v1088_v35 = vadd.f32 %v1087_v32, %v1086_v29 }
 0x20e   : > { %919 = vst [vmem:[%s252_s11] sm:$0xff] %v905_v34  ;;  %v908_v37 = vadd.f32 %v1088_v35, %v838_v36 }
 0x210   : > { %920 = vst [vmem:[%s252_s11 + $0x8] sm:$0xff] %v908_v37  ;;  %v1089_v38 = vpop.f32.mrb[4].mxu1 }
 0x211   : > { %v1090_v39 = vpop.f32.mrb[5].mxu1 }
 0x212   : > { %v1091_v40 = vadd.f32 %v1090_v39, %v1089_v38  ;;  %v1092_v41 = vpop.f32.mrb[6].mxu1 }
 0x213   : > { %v1093_v43 = vpop.f32.mrb[7].mxu1 }
 0x214   : > { %v913_v44 = vadd.f32 %v1091_v40, %v843_v42  ;;  %v1094_v45 = vadd.f32 %v1093_v43, %v1092_v41 }
 0x216   : > { %921 = vst [vmem:[%s252_s11 + $0x10] sm:$0xff] %v913_v44  ;;  %v916_v49 = vadd.f32 %v1094_v45, %v848_v46 }
 0x218   : > { %922 = vst [vmem:[%s252_s11 + $0x18] sm:$0xff] %v916_v49 }
 0x219 PF: > { %s15_s20 = sadd.s32 1, %s1201_s20   ;;  %s1533_s18 = smov %s1197_s19 }
 0x21a   : > { %p12_p5 = scmp.ge.s32.totalorder %s15_s20, 4   ;;  %s1534_s19 = smov %s1536_s21 }
 0x21c   :  { %14 = sbr.rel (!%p12_p5) target bundleno = 2 (0x2), region = 70 }

// kernel: a_call__.3
= control target key start
LH: loop header
LB: loop body
LE: loop exit
PB: predicated region body
PF: predicated region fallthrough
CT: control target
= control target key end

     0   :  { %s1234_s18 = smov 0   ;;  %s1236_s19 = smov 0   ;;  %s1527_s0 = inlined_call_operand.vmem [shape: f32[2,8,128], index: 0, kind: input, shape index: {}]   ;;  %s1528_s1 = inlined_call_operand.vmem [shape: bf16[256,8], index: 1, kind: input, shape index: {}]   ;;  %s1529_s2 = inlined_call_operand.vmem [shape: f32[256,1], index: 2, kind: input, shape index: {}]   ;;  %s1530_s3 = inlined_call_operand.vmem [shape: bf16[32,256], index: 3, kind: input, shape index: {}]   ;;  %s1531_s4 = inlined_call_operand.vmem [shape: f32[32,1], index: 4, kind: input, shape index: {}]   ;;  %s1532_s5 = inlined_call_operand.vmem [shape: f32[2,32,128], index: 5, kind: output, shape index: {}]  }
   0x1   :  { %s1238_s20 = smov 0  }
   0x2 LB: > { %s27_s21 = sadd.s32 1, %s1197_s19  ;;  %p1007_p0 = scmp.ge.s32.totalorder %s1201_s20, 1  ;;  %s1201_s20 = sphi %s1238_s20, %s15_s20   ;;  %s1197_s19 = sphi %s1236_s19, %s1534_s19   ;;  %s1193_s18 = sphi %s1234_s18, %s1533_s18  }
   0x3   : > { %p29_p1 = scmp.ge.s32.totalorder %s27_s21, 2  ;;  %p205_p2 = scmp.lt.s32.totalorder %s1201_s20, 3 }
   0x5   : > { %s1536_s21 = smov (%p29_p1, %s27_s21), 0  ;;  %p206_p3 = pnand %p1007_p0, %p205_p2 }
   0x6   : > { %p238_p4 = scmp.lt.s32.totalorder (!%p206_p3), %s1193_s18, 1  ;;  %v1157_v0 = vld [vmem:[%s1528_s1] sm:$0xff] (!%p206_p3)   ;;  %vm560_vm0 = vcmask (!%p206_p3), 64512   ;;  %v1203_v1 = vmov (!%p206_p3), 0   ;;  %vm609_vm1 = vcmask (!%p206_p3), 1043456   ;;  %v1158_v6 = vld [vmem:[%s1528_s1 + $0x8] sm:$0xff] (!%p206_p3)  }
   0x7   : > { %209 = sbr.rel (%p206_p3) target bundleno = 537 (0x219), region = 40  ;;  %1097 = vmatprep.mubr.msk.bf16.mxu0 (!%p206_p3), %vm560_vm0, %v1157_v0  ;;  %1156 = vset.pattern.permute.xlu1 (!%p206_p3), %v1203_v1  ;;  %v304_v3 = vld [vmem:[%s1529_s2 + $0x80] sm:$0xff] (!%p206_p3)  ;;  %v305_v7 = vld [vmem:[%s1529_s2 + $0x88] sm:$0xff] (!%p206_p3)  ;;  %v1159_v10 = vld [vmem:[%s1528_s1 + $0x10] sm:$0xff] (!%p206_p3)  }
   0x8   : > { %1155 = vset.pattern.permute.xlu0 (!%p206_p3), %v1203_v1  ;;  %v288_v5 = vld [vmem:[%s1529_s2] sm:$0xff] (!%p206_p3)  ;;  %v289_v9 = vld [vmem:[%s1529_s2 + $0x8] sm:$0xff] (!%p206_p3)  ;;  %v306_v11 = vld [vmem:[%s1529_s2 + $0x90] sm:$0xff] (!%p206_p3) }
   0x9   : > { %402 = vperm.xlu0 (!%p206_p3), %1155, %v304_v3   ;;  %322 = vperm.xlu1 (!%p206_p3), %1156, %v288_v5   ;;  %v307_v12 = vld [vmem:[%s1529_s2 + $0x98] sm:$0xff] (!%p206_p3)  ;;  %v290_v14 = vld [vmem:[%s1529_s2 + $0x10] sm:$0xff] (!%p206_p3)  ;;  %v1161_v16 = vld [vmem:[%s1528_s1 + $0x20] sm:$0xff] (!%p206_p3)  }
   0xa   : > { %v1160_v13 = vld [vmem:[%s1528_s1 + $0x18] sm:$0xff] (!%p206_p3)   ;;  %v308_v17 = vld [vmem:[%s1529_s2 + $0xa0] sm:$0xff] (!%p206_p3)  ;;  %v309_v18 = vld [vmem:[%s1529_s2 + $0xa8] sm:$0xff] (!%p206_p3) }
   0xb   : > { %v291_v15 = vld [vmem:[%s1529_s2 + $0x18] sm:$0xff] (!%p206_p3)  ;;  %v292_v19 = vld [vmem:[%s1529_s2 + $0x20] sm:$0xff] (!%p206_p3)  ;;  %v1162_v20 = vld [vmem:[%s1528_s1 + $0x28] sm:$0xff] (!%p206_p3)  }
   0xc   : > { %v293_v21 = vld [vmem:[%s1529_s2 + $0x28] sm:$0xff] (!%p206_p3)  ;;  %v1163_v22 = vld [vmem:[%s1528_s1 + $0x30] sm:$0xff] (!%p206_p3)   ;;  %v311_v24 = vld [vmem:[%s1529_s2 + $0xb8] sm:$0xff] (!%p206_p3) }
   0xd   : > { %407 = vperm.xlu0 (!%p206_p3), %1155, %v305_v7   ;;  %327 = vperm.xlu1 (!%p206_p3), %1156, %v289_v9   ;;  %v310_v23 = vld [vmem:[%s1529_s2 + $0xb0] sm:$0xff] (!%p206_p3)  ;;  %v1164_v26 = vld [vmem:[%s1528_s1 + $0x38] sm:$0xff] (!%p206_p3)   ;;  %v1165_v28 = vld [vmem:[%s1528_s1 + $0x40] sm:$0xff] (!%p206_p3)  }
   0xe   : > { %s1538_s18 = smov (!%p238_p4, %s1193_s18), 1  ;;  %v294_v25 = vld [vmem:[%s1529_s2 + $0x30] sm:$0xff]  ;;  %v295_v27 = vld [vmem:[%s1529_s2 + $0x38] sm:$0xff]  ;;  %v312_v29 = vld [vmem:[%s1529_s2 + $0xc0] sm:$0xff] }
   0xf   : > { %s1008_s24 = sshll.u32 %s1538_s18, 3  ;;  %v313_v30 = vld [vmem:[%s1529_s2 + $0xc8] sm:$0xff]  ;;  %v296_v31 = vld [vmem:[%s1529_s2 + $0x40] sm:$0xff]  ;;  %v1167_v34 = vld [vmem:[%s1528_s1 + $0x50] sm:$0xff]   ;;  %s1049_s8 = sshll.u32 %s1538_s18, 5 }
  0x10   : > { %s244_s27 = scalar_lea.vmem %s1527_s0, %s1008_s24  ;;  %v1166_v32 = vld [vmem:[%s1528_s1 + $0x48] sm:$0xff]   ;;  %v314_v35 = vld [vmem:[%s1529_s2 + $0xd0] sm:$0xff]  ;;  %v315_v36 = vld [vmem:[%s1529_s2 + $0xd8] sm:$0xff]  ;;  %s252_s11 = scalar_lea.vmem %s1532_s5, %s1049_s8 }
  0x11   : > { %v254_v2 = vld [vmem:[%s244_s27] sm:$0xff]  ;;  %412 = vperm.xlu0 %1155, %v306_v11   ;;  %417 = vperm.xlu1 %1156, %v307_v12   ;;  %v297_v33 = vld [vmem:[%s1529_s2 + $0x48] sm:$0xff]  ;;  %v298_v37 = vld [vmem:[%s1529_s2 + $0x50] sm:$0xff] }
  0x12   : > { %v255_v4 = vpack.c.bf16 %v254_v2, %v254_v2  ;;  %v1168_v38 = vld [vmem:[%s1528_s1 + $0x58] sm:$0xff]   ;;  %v1169_v40 = vld [vmem:[%s1528_s1 + $0x60] sm:$0xff]   ;;  %v317_v42 = vld [vmem:[%s1529_s2 + $0xe8] sm:$0xff] }
  0x13   : > { %v299_v39 = vld [vmem:[%s1529_s2 + $0x58] sm:$0xff]  ;;  %v316_v41 = vld [vmem:[%s1529_s2 + $0xe0] sm:$0xff]  ;;  %v1170_v44 = vld [vmem:[%s1528_s1 + $0x68] sm:$0xff]  }
  0x14   : > { %1129 = vmatprep.subr.msk.bf16.mxu0 %vm609_vm1, %v255_v4  ;;  %v611_v8 = vsel %vm609_vm1, %v255_v4, 0  ;;  %v300_v43 = vld [vmem:[%s1529_s2 + $0x60] sm:$0xff]  ;;  %v301_v45 = vld [vmem:[%s1529_s2 + $0x68] sm:$0xff]  ;;  %v1171_v46 = vld [vmem:[%s1528_s1 + $0x70] sm:$0xff]  }
  0x15   : > { %1096 = vmatpush3.bf16.msra.mxu0 %v611_v8  ;;  %332 = vperm.xlu0 %1155, %v290_v14   ;;  %v318_v47 = vld [vmem:[%s1529_s2 + $0xf0] sm:$0xff]  ;;  %v319_v48 = vld [vmem:[%s1529_s2 + $0xf8] sm:$0xff]  ;;  %v826_v52 = vld [vmem:[%s1531_s4] sm:$0xff] }
  0x16   : > { %337 = vperm.xlu1 %1156, %v291_v15   ;;  %v302_v49 = vld [vmem:[%s1529_s2 + $0x70] sm:$0xff]  ;;  %v1172_v50 = vld [vmem:[%s1528_s1 + $0x78] sm:$0xff]   ;;  %v827_v53 = vld [vmem:[%s1531_s4 + $0x8] sm:$0xff] }
  0x17   : > { %v303_v51 = vld [vmem:[%s1529_s2 + $0x78] sm:$0xff]  ;;  %v828_v54 = vld [vmem:[%s1531_s4 + $0x10] sm:$0xff]  ;;  %v1175_v60 = vld [vmem:[%s1530_s3 + $0x4] ss:$8 sps:$4 sm:$0xff]  }
  0x18   : > { %1098 = vmatmul.mubr.msk.bf16.vlgmr.msra.gmra.mrb[0].mxu0 %vm560_vm0, %v1158_v6  ;;  %v829_v55 = vld [vmem:[%s1531_s4 + $0x18] sm:$0xff]  ;;  %902 = vmatprep.mubr.bf16.mxu1 %v1175_v60 }
  0x19   : > { %1101 = vmatprep.mubr.msk.bf16.mxu0 %vm560_vm0, %v1159_v10  ;;  %422 = vperm.xlu0 %1155, %v308_v17  }
  0x1a   : > { %427 = vperm.xlu1 %1156, %v309_v18  }
  0x1d   : > { %342 = vperm.xlu0 %1155, %v292_v19  }
  0x1e   : > { %347 = vperm.xlu1 %1156, %v293_v21  }
  0x20   : > { %1102 = vmatmul.mubr.msk.bf16.gmra.mrb[4].mxu0 %vm560_vm0, %v1160_v13 }
  0x21   : > { %1105 = vmatprep.mubr.msk.bf16.mxu0 %vm560_vm0, %v1161_v16  ;;  %432 = vperm.xlu0 %1155, %v310_v23  }
  0x22   : > { %437 = vperm.xlu1 %1156, %v311_v24  }
  0x25   : > { %352 = vperm.xlu0 %1155, %v294_v25  }
  0x26   : > { %357 = vperm.xlu1 %1156, %v295_v27  }
  0x28   : > { %1106 = vmatmul.mubr.msk.bf16.gmra.mrb[8].mxu0 %vm560_vm0, %v1162_v20 }
  0x29   : > { %1109 = vmatprep.mubr.msk.bf16.mxu0 %vm560_vm0, %v1163_v22  ;;  %442 = vperm.xlu0 %1155, %v312_v29  }
  0x2a   : > { %447 = vperm.xlu1 %1156, %v313_v30  }
  0x2d   : > { %362 = vperm.xlu0 %1155, %v296_v31  }
  0x2e   : > { %367 = vperm.xlu1 %1156, %v297_v33  }
  0x30   : > { %1110 = vmatmul.mubr.msk.bf16.gmra.mrb[12].mxu0 %vm560_vm0, %v1164_v26 }
  0x31   : > { %1113 = vmatprep.mubr.msk.bf16.mxu0 %vm560_vm0, %v1165_v28  ;;  %452 = vperm.xlu0 %1155, %v314_v35  }
  0x32   : > { %457 = vperm.xlu1 %1156, %v315_v36  }
  0x35   : > { %372 = vperm.xlu0 %1155, %v298_v37  }
  0x36   : > { %377 = vperm.xlu1 %1156, %v299_v39  }
  0x38   : > { %1114 = vmatmul.mubr.msk.bf16.gmra.mrb[16].mxu0 %vm560_vm0, %v1166_v32 }
  0x39   : > { %1117 = vmatprep.mubr.msk.bf16.mxu0 %vm560_vm0, %v1167_v34  ;;  %462 = vperm.xlu0 %1155, %v316_v41  }
  0x3a   : > { %467 = vperm.xlu1 %1156, %v317_v42  }
  0x3d   : > { %382 = vperm.xlu0 %1155, %v300_v43  }
  0x3e   : > { %387 = vperm.xlu1 %1156, %v301_v45  }
  0x40   : > { %1118 = vmatmul.mubr.msk.bf16.gmra.mrb[20].mxu0 %vm560_vm0, %v1168_v38 }
  0x41   : > { %1121 = vmatprep.mubr.msk.bf16.mxu0 %vm560_vm0, %v1169_v40  ;;  %472 = vperm.xlu0 %1155, %v318_v47  }
  0x42   : > { %477 = vperm.xlu1 %1156, %v319_v48  }
  0x45   : > { %392 = vperm.xlu0 %1155, %v302_v49  }
  0x46   : > { %397 = vperm.xlu1 %1156, %v303_v51  }
  0x48   : > { %1122 = vmatmul.mubr.msk.bf16.gmra.mrb[24].mxu0 %vm560_vm0, %v1170_v44 }
  0x49   : > { %1125 = vmatprep.mubr.msk.bf16.mxu0 %vm560_vm0, %v1171_v46  ;;  %832 = vperm.xlu0 %1155, %v826_v52  }
  0x4a   : > { %837 = vperm.xlu1 %1156, %v827_v53  }
  0x4d   : > { %842 = vperm.xlu0 %1155, %v828_v54  }
  0x4e   : > { %847 = vperm.xlu1 %1156, %v829_v55  }
  0x50   : > { %1126 = vmatmul.mubr.msk.bf16.gmra.mrb[28].mxu0 %vm560_vm0, %v1172_v50 }
  0x88   : > { %v1430_v56 = vpop.permute.xlu0 %402  ;;  %v323_v57 = vpop.permute.xlu1 %322 }
  0x8c   : > { %v1432_v58 = vpop.permute.xlu0 %407  ;;  %v328_v59 = vpop.permute.xlu1 %327 }
  0x90   : > { %v1437_v61 = vpop.permute.xlu0 %412  ;;  %v1439_v62 = vpop.permute.xlu1 %417 }
  0x94   : > { %v333_v63 = vpop.permute.xlu0 %332 }
  0x95   : > { %v338_v0 = vpop.permute.xlu1 %337 }
  0x98   : > { %v1441_v1 = vpop.permute.xlu0 %422 }
  0x99   : > { %v1443_v2 = vpop.permute.xlu1 %427 }
  0x9c   : > { %v343_v3 = vpop.permute.xlu0 %342 }
  0x9d   : > { %v348_v4 = vpop.permute.xlu1 %347 }
  0xa0   : > { %v1445_v5 = vpop.permute.xlu0 %432 }
  0xa1   : > { %v1447_v6 = vpop.permute.xlu1 %437 }
  0xa4   : > { %v353_v7 = vpop.permute.xlu0 %352 }
  0xa5   : > { %v358_v8 = vpop.permute.xlu1 %357 }
  0xa8   : > { %v1449_v9 = vpop.permute.xlu0 %442 }
  0xa9   : > { %v1451_v10 = vpop.permute.xlu1 %447 }
  0xac   : > { %v363_v11 = vpop.permute.xlu0 %362 }
  0xad   : > { %v368_v12 = vpop.permute.xlu1 %367 }
  0xb0   : > { %v1453_v13 = vpop.permute.xlu0 %452 }
  0xb1   : > { %v1455_v14 = vpop.permute.xlu1 %457 }
  0xb4   : > { %v373_v15 = vpop.permute.xlu0 %372 }
  0xb5   : > { %v378_v19 = vpop.permute.xlu1 %377 }
  0xb8   : > { %v1457_v27 = vpop.permute.xlu0 %462 }
  0xb9   : > { %v1461_v31 = vpop.permute.xlu1 %467 }
  0xbc   : > { %v383_v40 = vpop.permute.xlu0 %382 }
  0xbd   : > { %v388_v44 = vpop.permute.xlu1 %387 }
  0xc0   : > { %v1469_v52 = vpop.permute.xlu0 %472 }
  0xeb   : > { %v1099_v16 = vpop.f32.mrb[0].mxu0 }
  0xec   : > { %v656_v17 = vadd.f32 %v1099_v16, %v333_v63  ;;  %v647_v18 = vpop.f32.mrb[1].mxu0 }
  0xed   : > { %v648_v20 = vadd.f32 %v647_v18, %v323_v57  ;;  %v1100_v21 = vpop.f32.mrb[2].mxu0 }
  0xee   : > { %v659_v22 = vadd.f32 %v1100_v21, %v338_v0  ;;  %v650_v23 = vpop.f32.mrb[3].mxu0  ;;  %v776_v25 = vmax.f32 %v656_v17, 0.0 }
  0xef   : > { %v651_v24 = vadd.f32 %v650_v23, %v328_v59  ;;  %v774_v28 = vmax.f32 %v648_v20, 0.0  ;;  %v1471_v59 = vpop.permute.xlu1 %477 }
  0xf0   : > { %v777_v26 = vmax.f32 %v659_v22, 0.0 }
  0xf1   : > { %v775_v29 = vmax.f32 %v651_v24, 0.0 }
  0xf2   : > { %v1459_v30 = vpack.c.bf16 %v777_v26, %v776_v25 }
  0xf3   : > { %v1103_v32 = vpop.f32.mrb[4].mxu0  ;;  %v1463_v33 = vpack.c.bf16 %v775_v29, %v774_v28  ;;  %v398_v20 = vpop.permute.xlu1 %397 }
  0xf4   : > { %v672_v34 = vadd.f32 %v1103_v32, %v353_v7  ;;  %v663_v35 = vpop.f32.mrb[5].mxu0 }
  0xf5   : > { %v664_v36 = vadd.f32 %v663_v35, %v343_v3  ;;  %v1104_v37 = vpop.f32.mrb[6].mxu0 }
  0xf6   : > { %v675_v38 = vadd.f32 %v1104_v37, %v358_v8  ;;  %v666_v39 = vpop.f32.mrb[7].mxu0  ;;  %v780_v42 = vmax.f32 %v672_v34, 0.0  ;;  %v393_v8 = vpop.permute.xlu0 %392 }
  0xf7   : > { %v667_v41 = vadd.f32 %v666_v39, %v348_v4  ;;  %v778_v45 = vmax.f32 %v664_v36, 0.0 }
  0xf8   : > { %v781_v43 = vmax.f32 %v675_v38, 0.0 }
  0xf9   : > { %v779_v46 = vmax.f32 %v667_v41, 0.0 }
  0xfa   : > { %v1465_v47 = vpack.c.bf16 %v781_v43, %v780_v42 }
  0xfb   : > { %v1467_v48 = vpack.c.bf16 %v779_v46, %v778_v45  ;;  %v1107_v49 = vpop.f32.mrb[8].mxu0 }
  0xfc   : > { %v688_v50 = vadd.f32 %v1107_v49, %v373_v15  ;;  %v679_v51 = vpop.f32.mrb[9].mxu0 }
  0xfd   : > { %v680_v53 = vadd.f32 %v679_v51, %v363_v11  ;;  %v1108_v54 = vpop.f32.mrb[10].mxu0 }
  0xfe   : > { %v691_v55 = vadd.f32 %v1108_v54, %v378_v19  ;;  %v682_v57 = vpop.f32.mrb[11].mxu0  ;;  %v784_v63 = vmax.f32 %v688_v50, 0.0 }
  0xff   : > { %v683_v60 = vadd.f32 %v682_v57, %v368_v12  ;;  %v782_v3 = vmax.f32 %v680_v53, 0.0 }
 0x100   : > { %v785_v0 = vmax.f32 %v691_v55, 0.0 }
 0x101   : > { %v783_v4 = vmax.f32 %v683_v60, 0.0 }
 0x102   : > { %v1473_v7 = vpack.c.bf16 %v785_v0, %v784_v63 }
 0x103   : > { %v1475_v16 = vpack.c.bf16 %v783_v4, %v782_v3  ;;  %v1111_v15 = vpop.f32.mrb[12].mxu0 }
 0x104   : > { %v704_v17 = vadd.f32 %v1111_v15, %v393_v8  ;;  %v695_v18 = vpop.f32.mrb[13].mxu0 }
 0x105   : > { %v696_v11 = vadd.f32 %v695_v18, %v383_v40  ;;  %v1112_v21 = vpop.f32.mrb[14].mxu0 }
 0x106   : > { %v707_v19 = vadd.f32 %v1112_v21, %v398_v20  ;;  %v698_v22 = vpop.f32.mrb[15].mxu0  ;;  %v788_v24 = vmax.f32 %v704_v17, 0.0 }
 0x107   : > { %v699_v23 = vadd.f32 %v698_v22, %v388_v44  ;;  %v786_v25 = vmax.f32 %v696_v11, 0.0 }
 0x108   : > { %v789_v12 = vmax.f32 %v707_v19, 0.0 }
 0x109   : > { %v787_v26 = vmax.f32 %v699_v23, 0.0 }
 0x10a   : > { %v1477_v28 = vpack.c.bf16 %v789_v12, %v788_v24 }
 0x10b   : > { %v1479_v29 = vpack.c.bf16 %v787_v26, %v786_v25  ;;  %v1115_v32 = vpop.f32.mrb[16].mxu0 }
 0x10c   : > { %v720_v34 = vadd.f32 %v1115_v32, %v1437_v61  ;;  %v711_v35 = vpop.f32.mrb[17].mxu0 }
 0x10d   : > { %v712_v36 = vadd.f32 %v711_v35, %v1430_v56  ;;  %v1116_v37 = vpop.f32.mrb[18].mxu0 }
 0x10e   : > { %v723_v38 = vadd.f32 %v1116_v37, %v1439_v62  ;;  %v714_v39 = vpop.f32.mrb[19].mxu0  ;;  %v792_v41 = vmax.f32 %v720_v34, 0.0 }
 0x10f   : > { %v715_v40 = vadd.f32 %v714_v39, %v1432_v58  ;;  %v790_v43 = vmax.f32 %v712_v36, 0.0  ;;  %v838_v36 = vpop.permute.xlu1 %837 }
 0x110   : > { %v793_v42 = vmax.f32 %v723_v38, 0.0 }
 0x111   : > { %v791_v44 = vmax.f32 %v715_v40, 0.0 }
 0x112   : > { %v819_v45 = vpack.c.bf16 %v793_v42, %v792_v41 }
 0x113   : > { %v1119_v46 = vpop.f32.mrb[20].mxu0  ;;  %v818_v49 = vpack.c.bf16 %v791_v44, %v790_v43 }
 0x114   : > { %v736_v50 = vadd.f32 %v1119_v46, %v1445_v5  ;;  %v727_v51 = vpop.f32.mrb[21].mxu0  ;;  %v848_v46 = vpop.permute.xlu1 %847 }
 0x115   : > { %v728_v61 = vadd.f32 %v727_v51, %v1441_v1  ;;  %v1120_v53 = vpop.f32.mrb[22].mxu0  ;;  %1067 = vmatprep.subr.bf16.mxu1 %v818_v49 }
 0x116   : > { %v739_v56 = vadd.f32 %v1120_v53, %v1447_v6  ;;  %v730_v62 = vpop.f32.mrb[23].mxu0  ;;  %1068 = vmatpush3.bf16.msra.mxu1 %v1463_v33  ;;  %v796_v54 = vmax.f32 %v736_v50, 0.0 }
 0x117   : > { %v731_v58 = vadd.f32 %v730_v62, %v1443_v2  ;;  %1069 = vmatprep.subr.bf16.mxu1 %v819_v45  ;;  %v794_v57 = vmax.f32 %v728_v61, 0.0 }
 0x118   : > { %v797_v55 = vmax.f32 %v739_v56, 0.0 }
 0x119   : > { %v795_v60 = vmax.f32 %v731_v58, 0.0 }
 0x11a   : > { %v821_v63 = vpack.c.bf16 %v797_v55, %v796_v54  ;;  %1070 = vmatpush3.bf16.msra.mxu1 %v1459_v30 }
 0x11b   : > { %v820_v5 = vpack.c.bf16 %v795_v60, %v794_v57  ;;  %v1123_v0 = vpop.f32.mrb[24].mxu0 }
 0x11c   : > { %v752_v1 = vadd.f32 %v1123_v0, %v1453_v13  ;;  %v743_v3 = vpop.f32.mrb[25].mxu0 }
 0x11d   : > { %v744_v6 = vadd.f32 %v743_v3, %v1449_v9  ;;  %v1124_v4 = vpop.f32.mrb[26].mxu0  ;;  %1071 = vmatprep.subr.bf16.mxu1 %v820_v5 }
 0x11e   : > { %v755_v33 = vadd.f32 %v1124_v4, %v1455_v14  ;;  %v746_v2 = vpop.f32.mrb[27].mxu0  ;;  %1072 = vmatpush3.bf16.msra.mxu1 %v1467_v48  ;;  %v800_v15 = vmax.f32 %v752_v1, 0.0 }
 0x11f   : > { %v747_v8 = vadd.f32 %v746_v2, %v1451_v10  ;;  %1073 = vmatprep.subr.bf16.mxu1 %v821_v63  ;;  %v798_v30 = vmax.f32 %v744_v6, 0.0 }
 0x120   : > { %v801_v17 = vmax.f32 %v755_v33, 0.0 }
 0x121   : > { %v799_v18 = vmax.f32 %v747_v8, 0.0 }
 0x122   : > { %v823_v20 = vpack.c.bf16 %v801_v17, %v800_v15  ;;  %1074 = vmatpush3.bf16.msra.mxu1 %v1465_v47 }
 0x123   : > { %v822_v13 = vpack.c.bf16 %v799_v18, %v798_v30  ;;  %v1127_v11 = vpop.f32.mrb[28].mxu0 }
 0x124   : > { %v768_v9 = vadd.f32 %v1127_v11, %v1469_v52  ;;  %v759_v21 = vpop.f32.mrb[29].mxu0 }
 0x125   : > { %v760_v14 = vadd.f32 %v759_v21, %v1457_v27  ;;  %v1128_v19 = vpop.f32.mrb[30].mxu0  ;;  %1075 = vmatprep.subr.bf16.mxu1 %v822_v13  ;;  %v1173_v27 = vld [vmem:[%s1530_s3] ss:$8 sps:$4 sm:$0xff]  }
 0x126   : > { %v771_v48 = vadd.f32 %v1128_v19, %v1471_v59  ;;  %v762_v10 = vpop.f32.mrb[31].mxu0  ;;  %1076 = vmatpush3.bf16.msra.mxu1 %v1475_v16  ;;  %v804_v23 = vmax.f32 %v768_v9, 0.0  ;;  %v1178_v59 = vld [vmem:[%s1530_s3 + $0x10] ss:$8 sps:$4 sm:$0xff]  }
 0x127   : > { %v763_v22 = vadd.f32 %v762_v10, %v1461_v31  ;;  %1077 = vmatprep.subr.bf16.mxu1 %v823_v20  ;;  %v802_v47 = vmax.f32 %v760_v14, 0.0  ;;  %v1176_v31 = vld [vmem:[%s1530_s3 + $0x14] ss:$8 sps:$4 sm:$0xff]  }
 0x128   : > { %v805_v24 = vmax.f32 %v771_v48, 0.0 }
 0x129   : > { %v803_v12 = vmax.f32 %v763_v22, 0.0 }
 0x12a   : > { %v825_v25 = vpack.c.bf16 %v805_v24, %v804_v23  ;;  %1078 = vmatpush3.bf16.msra.mxu1 %v1473_v7 }
 0x12b   : > { %v824_v52 = vpack.c.bf16 %v803_v12, %v802_v47 }
 0x12d   : > { %1079 = vmatprep.subr.bf16.mxu1 %v824_v52 }
 0x12e   : > { %1080 = vmatpush3.bf16.msra.mxu1 %v1479_v29 }
 0x12f   : > { %1081 = vmatprep.subr.bf16.mxu1 %v825_v25 }
 0x132   : > { %1082 = vmatpush3.bf16.msra.mxu1 %v1477_v28  ;;  %v833_v28 = vpop.permute.xlu0 %832 }
 0x135   : > { %903 = vmatmul.mubr.bf16.vlgmr.msra.gmra.mrb[0].mxu1 %v1173_v27 }
 0x136   : > { %910 = vmatprep.mubr.bf16.mxu1 %v1176_v31  ;;  %v843_v42 = vpop.permute.xlu0 %842 }
 0x13d   : > { %911 = vmatmul.mubr.bf16.gmra.mrb[4].mxu1 %v1178_v59 }
 0x208   : > { %v1083_v7 = vpop.f32.mrb[0].mxu1 }
 0x209   : > { %v1084_v16 = vpop.f32.mrb[1].mxu1 }
 0x20a   : > { %v1085_v26 = vadd.f32 %v1084_v16, %v1083_v7  ;;  %v1086_v29 = vpop.f32.mrb[2].mxu1 }
 0x20b   : > { %v1087_v32 = vpop.f32.mrb[3].mxu1 }
 0x20c   : > { %v905_v34 = vadd.f32 %v1085_v26, %v833_v28  ;;  %v1088_v35 = vadd.f32 %v1087_v32, %v1086_v29 }
 0x20e   : > { %919 = vst [vmem:[%s252_s11] sm:$0xff] %v905_v34  ;;  %v908_v37 = vadd.f32 %v1088_v35, %v838_v36 }
 0x210   : > { %920 = vst [vmem:[%s252_s11 + $0x8] sm:$0xff] %v908_v37  ;;  %v1089_v38 = vpop.f32.mrb[4].mxu1 }
 0x211   : > { %v1090_v39 = vpop.f32.mrb[5].mxu1 }
 0x212   : > { %v1091_v40 = vadd.f32 %v1090_v39, %v1089_v38  ;;  %v1092_v41 = vpop.f32.mrb[6].mxu1 }
 0x213   : > { %v1093_v43 = vpop.f32.mrb[7].mxu1 }
 0x214   : > { %v913_v44 = vadd.f32 %v1091_v40, %v843_v42  ;;  %v1094_v45 = vadd.f32 %v1093_v43, %v1092_v41 }
 0x216   : > { %921 = vst [vmem:[%s252_s11 + $0x10] sm:$0xff] %v913_v44  ;;  %v916_v49 = vadd.f32 %v1094_v45, %v848_v46 }
 0x218   : > { %922 = vst [vmem:[%s252_s11 + $0x18] sm:$0xff] %v916_v49 }
 0x219 PF: > { %s15_s20 = sadd.s32 1, %s1201_s20   ;;  %s1533_s18 = smov %s1197_s19 }
 0x21a   : > { %p12_p5 = scmp.ge.s32.totalorder %s15_s20, 4   ;;  %s1534_s19 = smov %s1536_s21 }
 0x21c   :  { %14 = sbr.rel (!%p12_p5) target bundleno = 2 (0x2), region = 70 }

</bundles_post_ra>
